<compile_context>
chip_gen: v5e
topology: v5e:2x2
jax: 0.10.0
libtpu: 0.0.40
codegen_flags: <defaults>
</compile_context>

<pallas_src>
import functools

import jax
import jax.numpy as jnp
from jax import lax
from jax.experimental import pallas as pl
from jax.experimental.pallas import tpu as pltpu


def _ffn_layernorm_kernel(x_ref, w1t_ref, b1_ref, w2t_ref, b2_ref,
                          gamma_ref, beta_ref, o_ref, *,
                          eps, chunk_i, matmul_dtype):
    # x_ref: (TM, H) activations (model dtype)
    # w1t_ref: (H, I) bf16   b1_ref: (1, I) f32
    # w2t_ref: (I, H) bf16   b2_ref/gamma_ref/beta_ref: (1, H) f32
    x = x_ref[...]
    x32 = x.astype(jnp.float32)
    xm = x.astype(matmul_dtype)          # bf16 operand for the MXU

    tm, h_dim = x.shape
    i_dim = w1t_ref.shape[1]

    # Chunk the intermediate dim: only a (tm, chunk) slab of the intermediate
    # activation is ever live; y accumulates in f32. Chunk offsets are static
    # multiples of chunk_i (lane-aligned for production I that is a multiple
    # of 128; correctness does not depend on alignment).
    y = jnp.zeros((tm, h_dim), jnp.float32)
    for start in range(0, i_dim, chunk_i):
        size = min(chunk_i, i_dim - start)
        w1c = w1t_ref[:, start:start + size]          # (H, size) bf16
        b1c = b1_ref[:, start:start + size]           # (1, size) f32
        w2c = w2t_ref[start:start + size, :]          # (size, H) bf16

        hc = jnp.dot(xm, w1c, preferred_element_type=jnp.float32) + b1c
        hc = jax.nn.gelu(hc, approximate=True)        # tanh GELU -> EUP, f32
        y = y + jnp.dot(hc.astype(matmul_dtype), w2c,
                        preferred_element_type=jnp.float32)

    # BertOutput: dense bias + residual, then LayerNorm over H, all in f32.
    z = y + b2_ref[...] + x32
    mean = jnp.mean(z, axis=-1, keepdims=True)
    zc = z - mean
    var = jnp.mean(zc * zc, axis=-1, keepdims=True)
    inv = lax.rsqrt(var + eps)
    o_ref[...] = (zc * inv * gamma_ref[...] + beta_ref[...]).astype(o_ref.dtype)


def no_attention_forward(x, w1, b1, w2, b2, gamma, beta, *,
                         eps=1e-12, block_rows=256, chunk_i=512,
                         matmul_dtype=jnp.bfloat16):
    """x: (B, S, H). w1: (I, H) = intermediate.dense.weight, b1: (I,).
    w2: (H, I) = output.dense.weight, b2: (H,). gamma/beta: (H,) LayerNorm."""
    B, S, H = x.shape
    I = w1.shape[0]
    M = B * S

    xf = x.reshape(M, H)

    # One-time transpose + cast of the weights (fused by XLA into a single
    # pass) so the kernel's matmuls are canonical [M,K]@[K,N] with bf16 MXU
    # operands: half the weight HBM traffic / VMEM residency, no in-kernel
    # transposes on the XLU.
    w1t = w1.T.astype(matmul_dtype)                    # (H, I)
    w2t = w2.T.astype(matmul_dtype)                    # (I, H)
    b1_2d = b1.reshape(1, I).astype(jnp.float32)
    b2_2d = b2.reshape(1, H).astype(jnp.float32)
    gamma_2d = gamma.reshape(1, H).astype(jnp.float32)
    beta_2d = beta.reshape(1, H).astype(jnp.float32)

    # Row tile: full extent for small M (always legal), otherwise block_rows
    # (multiple of 128 -> clean MXU passes). No jnp.pad: ragged final block is
    # safe because every op is row-independent.
    tm = block_rows if M > block_rows else M
    grid = (pl.cdiv(M, tm),)

    w_bytes = jnp.dtype(matmul_dtype).itemsize
    cost = pl.CostEstimate(
        flops=int(4 * M * H * I),                      # two (M,H)x(H,I) matmuls
        transcendentals=int(M * I),                    # tanh in GELU
        bytes_accessed=int(x.dtype.itemsize * 2 * M * H    # x read + out write
                           + w_bytes * 2 * H * I           # bf16 W1 + W2
                           + 4 * (I + 3 * H)),             # biases + LN params
    )

    kernel = functools.partial(_ffn_layernorm_kernel, eps=eps,
                               chunk_i=chunk_i, matmul_dtype=matmul_dtype)

    def run(single_buffer_weights):
        # Grid-invariant operands: constant index_map; request a single VMEM
        # buffer (double-buffering a resident weight buys nothing and doubles
        # its VMEM footprint — the key lever for v7x's 64 MiB VMEM).
        res = ({"pipeline_mode": pl.Buffered(1)}
               if single_buffer_weights else {})
        return pl.pallas_call(
            kernel,
            out_shape=jax.ShapeDtypeStruct((M, H), x.dtype),
            grid=grid,
            in_specs=[
                pl.BlockSpec((tm, H), lambda i: (i, 0)),          # x (pipelined)
                pl.BlockSpec((H, I), lambda i: (0, 0), **res),    # W1^T resident
                pl.BlockSpec((1, I), lambda i: (0, 0), **res),    # b1
                pl.BlockSpec((I, H), lambda i: (0, 0), **res),    # W2^T resident
                pl.BlockSpec((1, H), lambda i: (0, 0), **res),    # b2
                pl.BlockSpec((1, H), lambda i: (0, 0), **res),    # gamma
                pl.BlockSpec((1, H), lambda i: (0, 0), **res),    # beta
            ],
            out_specs=pl.BlockSpec((tm, H), lambda i: (i, 0)),
            compiler_params=pltpu.CompilerParams(
                dimension_semantics=("parallel",),     # megacore split of rows
                vmem_limit_bytes=56 * 1024 * 1024,     # headroom under v7x 64MiB
            ),
            cost_estimate=cost,
        )(xf, w1t, b1_2d, w2t, b2_2d, gamma_2d, beta_2d)

    try:
        out_flat = run(True)
    except Exception:
        # pipeline_mode=pl.Buffered(1) not supported by this jax version's TPU
        # lowering: fall back to default (double-buffered) resident weights.
        out_flat = run(False)

    return out_flat.reshape(B, S, H)


def reference(x, w1, b1, w2, b2, gamma, beta, eps=1e-12,
              matmul_dtype=jnp.bfloat16):
    # Mirrors the kernel's numerics (bf16 MXU operands, f32 accumulation,
    # tanh GELU, f32 LayerNorm).
    w1t = w1.T.astype(matmul_dtype)
    w2t = w2.T.astype(matmul_dtype)
    h = jnp.dot(x.astype(matmul_dtype), w1t,
                preferred_element_type=jnp.float32) + b1
    h = jax.nn.gelu(h, approximate=True)
    y = jnp.dot(h.astype(matmul_dtype), w2t,
                preferred_element_type=jnp.float32) + b2
    z = y + x.astype(jnp.float32)
    mean = z.mean(-1, keepdims=True)
    var = ((z - mean) ** 2).mean(-1, keepdims=True)
    out = (z - mean) / jnp.sqrt(var + eps) * gamma + beta
    return out.astype(x.dtype)


if __name__ == "__main__":
    # Small shapes consistent with the module: batch=2, seq=8, hidden=32,
    # intermediate = 4*hidden = 128 (standard BERT expansion).
    B, S, H, I = 2, 8, 32, 128

    key = jax.random.PRNGKey(0)
    kx, k1, k2, kg, kb = jax.random.split(key, 5)

    x = jax.random.normal(kx, (B, S, H), dtype=jnp.float32)
    w1 = jax.random.normal(k1, (I, H), dtype=jnp.float32) * 0.05   # intermediate.dense.weight
    b1 = jnp.zeros((I,), dtype=jnp.float32)                        # intermediate.dense.bias
    w2 = jax.random.normal(k2, (H, I), dtype=jnp.float32) * 0.05   # output.dense.weight
    b2 = jnp.zeros((H,), dtype=jnp.float32)                        # output.dense.bias
    gamma = 1.0 + 0.1 * jax.random.normal(kg, (H,), dtype=jnp.float32)  # LayerNorm.weight
    beta = 0.1 * jax.random.normal(kb, (H,), dtype=jnp.float32)         # LayerNorm.bias

    out = no_attention_forward(x, w1, b1, w2, b2, gamma, beta)
    out = jax.block_until_ready(out)

    ref = reference(x, w1, b1, w2, b2, gamma, beta)
    assert out.shape == x.shape
    err = float(jnp.max(jnp.abs(out - ref)))
    assert jnp.allclose(out, ref, atol=5e-3, rtol=5e-3), err

    print("KERNEL_OK")
</pallas_src>

<mosaic_0001>
module attributes {stable_mosaic.version = 11 : i64} {
  func.func @_ffn_layernorm_kernel(%arg0: i32, %arg1: memref<16x32xf32, #tpu.memory_space<vmem>>, %arg2: memref<32x128xbf16, #tpu.memory_space<vmem>>, %arg3: memref<1x128xf32, #tpu.memory_space<vmem>>, %arg4: memref<128x32xbf16, #tpu.memory_space<vmem>>, %arg5: memref<1x32xf32, #tpu.memory_space<vmem>>, %arg6: memref<1x32xf32, #tpu.memory_space<vmem>>, %arg7: memref<1x32xf32, #tpu.memory_space<vmem>>, %arg8: memref<16x32xf32, #tpu.memory_space<vmem>>) attributes {dimension_semantics = [#tpu.dimension_semantics<parallel>], iteration_bounds = array<i64: 1>, scalar_prefetch = 0 : i64, scratch_operands = 0 : i64, tpu.core_type = #tpu.core_type<tc>, window_params = [{transform_indices = @transform_0, window_bounds = array<i64: 16, 32>}, {pipeline_mode = #tpu.pipeline_mode<synchronous>, transform_indices = @transform_1, window_bounds = array<i64: 32, 128>}, {pipeline_mode = #tpu.pipeline_mode<synchronous>, transform_indices = @transform_2, window_bounds = array<i64: 1, 128>}, {pipeline_mode = #tpu.pipeline_mode<synchronous>, transform_indices = @transform_3, window_bounds = array<i64: 128, 32>}, {pipeline_mode = #tpu.pipeline_mode<synchronous>, transform_indices = @transform_4, window_bounds = array<i64: 1, 32>}, {pipeline_mode = #tpu.pipeline_mode<synchronous>, transform_indices = @transform_5, window_bounds = array<i64: 1, 32>}, {pipeline_mode = #tpu.pipeline_mode<synchronous>, transform_indices = @transform_6, window_bounds = array<i64: 1, 32>}, {transform_indices = @transform_7, window_bounds = array<i64: 16, 32>}]} {
    %c0 = arith.constant 0 : index
    %c0_0 = arith.constant 0 : index
    %0 = vector.load %arg1[%c0, %c0_0] : memref<16x32xf32, #tpu.memory_space<vmem>>, vector<16x32xf32>
    %1 = arith.truncf %0 : vector<16x32xf32> to vector<16x32xbf16>
    %cst = arith.constant 0.000000e+00 : f32
    %2 = vector.broadcast %cst : f32 to vector<16x32xf32>
    %c0_1 = arith.constant 0 : index
    %c0_2 = arith.constant 0 : index
    %3 = vector.load %arg2[%c0_1, %c0_2] : memref<32x128xbf16, #tpu.memory_space<vmem>>, vector<32x128xbf16>
    %c0_3 = arith.constant 0 : index
    %c0_4 = arith.constant 0 : index
    %4 = vector.load %arg3[%c0_3, %c0_4] : memref<1x128xf32, #tpu.memory_space<vmem>>, vector<1x128xf32>
    %c0_5 = arith.constant 0 : index
    %c0_6 = arith.constant 0 : index
    %5 = vector.load %arg4[%c0_5, %c0_6] : memref<128x32xbf16, #tpu.memory_space<vmem>>, vector<128x32xbf16>
    %cst_7 = arith.constant dense<0.000000e+00> : vector<16x128xf32>
    %6 = tpu.matmul %1, %3, %cst_7 {dimension_numbers = #tpu.dot_dimension_numbers<[1], [0], [0], [1], [0, 0, 1, 1], [], []>} : vector<16x32xbf16>, vector<32x128xbf16>, vector<16x128xf32> -> vector<16x128xf32>
    %7 = vector.broadcast %4 : vector<1x128xf32> to vector<16x128xf32>
    %8 = arith.addf %6, %7 : vector<16x128xf32>
    %9 = arith.mulf %8, %8 : vector<16x128xf32>
    %10 = arith.mulf %8, %9 : vector<16x128xf32>
    %cst_8 = arith.constant 4.471500e-02 : f32
    %11 = vector.broadcast %cst_8 : f32 to vector<16x128xf32>
    %12 = arith.mulf %11, %10 : vector<16x128xf32>
    %13 = arith.addf %8, %12 : vector<16x128xf32>
    %cst_9 = arith.constant 0.797884583 : f32
    %14 = vector.broadcast %cst_9 : f32 to vector<16x128xf32>
    %15 = arith.mulf %14, %13 : vector<16x128xf32>
    %16 = math.tanh %15 : vector<16x128xf32>
    %cst_10 = arith.constant 1.000000e+00 : f32
    %17 = vector.broadcast %cst_10 : f32 to vector<16x128xf32>
    %18 = arith.addf %17, %16 : vector<16x128xf32>
    %cst_11 = arith.constant 5.000000e-01 : f32
    %19 = vector.broadcast %cst_11 : f32 to vector<16x128xf32>
    %20 = arith.mulf %19, %18 : vector<16x128xf32>
    %21 = arith.mulf %8, %20 : vector<16x128xf32>
    %22 = arith.truncf %21 : vector<16x128xf32> to vector<16x128xbf16>
    %cst_12 = arith.constant dense<0.000000e+00> : vector<16x32xf32>
    %23 = tpu.matmul %22, %5, %cst_12 {dimension_numbers = #tpu.dot_dimension_numbers<[1], [0], [0], [1], [0, 0, 1, 1], [], []>} : vector<16x128xbf16>, vector<128x32xbf16>, vector<16x32xf32> -> vector<16x32xf32>
    %24 = arith.addf %2, %23 : vector<16x32xf32>
    %c0_13 = arith.constant 0 : index
    %c0_14 = arith.constant 0 : index
    %25 = vector.load %arg5[%c0_13, %c0_14] : memref<1x32xf32, #tpu.memory_space<vmem>>, vector<1x32xf32>
    %26 = vector.broadcast %25 : vector<1x32xf32> to vector<16x32xf32>
    %27 = arith.addf %24, %26 : vector<16x32xf32>
    %28 = arith.addf %27, %0 : vector<16x32xf32>
    %cst_15 = arith.constant dense<0.000000e+00> : vector<16xf32>
    %29 = vector.multi_reduction <add>, %28, %cst_15 [1] : vector<16x32xf32> to vector<16xf32>
    %30 = vector.shape_cast %29 : vector<16xf32> to vector<16x1xf32>
    %cst_16 = arith.constant 3.200000e+01 : f32
    %31 = vector.broadcast %cst_16 : f32 to vector<16x1xf32>
    %32 = arith.divf %30, %31 : vector<16x1xf32>
    %33 = vector.broadcast %32 : vector<16x1xf32> to vector<16x32xf32>
    %34 = arith.subf %28, %33 : vector<16x32xf32>
    %35 = arith.mulf %34, %34 : vector<16x32xf32>
    %cst_17 = arith.constant dense<0.000000e+00> : vector<16xf32>
    %36 = vector.multi_reduction <add>, %35, %cst_17 [1] : vector<16x32xf32> to vector<16xf32>
    %37 = vector.shape_cast %36 : vector<16xf32> to vector<16x1xf32>
    %cst_18 = arith.constant 3.200000e+01 : f32
    %38 = vector.broadcast %cst_18 : f32 to vector<16x1xf32>
    %39 = arith.divf %37, %38 : vector<16x1xf32>
    %cst_19 = arith.constant 9.99999996E-13 : f32
    %40 = vector.broadcast %cst_19 : f32 to vector<16x1xf32>
    %41 = arith.addf %39, %40 : vector<16x1xf32>
    %42 = math.rsqrt %41 : vector<16x1xf32>
    %43 = vector.broadcast %42 : vector<16x1xf32> to vector<16x32xf32>
    %44 = arith.mulf %34, %43 : vector<16x32xf32>
    %c0_20 = arith.constant 0 : index
    %c0_21 = arith.constant 0 : index
    %45 = vector.load %arg6[%c0_20, %c0_21] : memref<1x32xf32, #tpu.memory_space<vmem>>, vector<1x32xf32>
    %46 = vector.broadcast %45 : vector<1x32xf32> to vector<16x32xf32>
    %47 = arith.mulf %44, %46 : vector<16x32xf32>
    %c0_22 = arith.constant 0 : index
    %c0_23 = arith.constant 0 : index
    %48 = vector.load %arg7[%c0_22, %c0_23] : memref<1x32xf32, #tpu.memory_space<vmem>>, vector<1x32xf32>
    %49 = vector.broadcast %48 : vector<1x32xf32> to vector<16x32xf32>
    %50 = arith.addf %47, %49 : vector<16x32xf32>
    %c0_24 = arith.constant 0 : index
    %c0_25 = arith.constant 0 : index
    %51 = vector.load %arg8[%c0_24, %c0_25] : memref<16x32xf32, #tpu.memory_space<vmem>>, vector<16x32xf32>
    tpu.vector_store %arg8[%c0_24, %c0_25], %50 {strides = array<i32>} : memref<16x32xf32, #tpu.memory_space<vmem>>, vector<16x32xf32>,
    return
  }
  func.func @transform_0(%arg0: i32) -> (i32, i32) {
    %c0_i32 = arith.constant 0 : i32
    %c0_i32_0 = arith.constant 0 : i32
    return %arg0, %c0_i32 : i32, i32
  }
  func.func @transform_1(%arg0: i32) -> (i32, i32) {
    %c0_i32 = arith.constant 0 : i32
    %c0_i32_0 = arith.constant 0 : i32
    %c0_i32_1 = arith.constant 0 : i32
    return %c0_i32, %c0_i32_0 : i32, i32
  }
  func.func @transform_2(%arg0: i32) -> (i32, i32) {
    %c0_i32 = arith.constant 0 : i32
    %c0_i32_0 = arith.constant 0 : i32
    %c0_i32_1 = arith.constant 0 : i32
    return %c0_i32, %c0_i32_0 : i32, i32
  }
  func.func @transform_3(%arg0: i32) -> (i32, i32) {
    %c0_i32 = arith.constant 0 : i32
    %c0_i32_0 = arith.constant 0 : i32
    %c0_i32_1 = arith.constant 0 : i32
    return %c0_i32, %c0_i32_0 : i32, i32
  }
  func.func @transform_4(%arg0: i32) -> (i32, i32) {
    %c0_i32 = arith.constant 0 : i32
    %c0_i32_0 = arith.constant 0 : i32
    %c0_i32_1 = arith.constant 0 : i32
    return %c0_i32, %c0_i32_0 : i32, i32
  }
  func.func @transform_5(%arg0: i32) -> (i32, i32) {
    %c0_i32 = arith.constant 0 : i32
    %c0_i32_0 = arith.constant 0 : i32
    %c0_i32_1 = arith.constant 0 : i32
    return %c0_i32, %c0_i32_0 : i32, i32
  }
  func.func @transform_6(%arg0: i32) -> (i32, i32) {
    %c0_i32 = arith.constant 0 : i32
    %c0_i32_0 = arith.constant 0 : i32
    %c0_i32_1 = arith.constant 0 : i32
    return %c0_i32, %c0_i32_0 : i32, i32
  }
  func.func @transform_7(%arg0: i32) -> (i32, i32) {
    %c0_i32 = arith.constant 0 : i32
    %c0_i32_0 = arith.constant 0 : i32
    return %arg0, %c0_i32 : i32, i32
  }
}

module attributes {stable_mosaic.version = 11 : i64} {
  func.func @_ffn_layernorm_kernel(%arg0: i32, %arg1: memref<16x32xf32, #tpu.memory_space<vmem>>, %arg2: memref<32x128xbf16, #tpu.memory_space<vmem>>, %arg3: memref<1x128xf32, #tpu.memory_space<vmem>>, %arg4: memref<128x32xbf16, #tpu.memory_space<vmem>>, %arg5: memref<1x32xf32, #tpu.memory_space<vmem>>, %arg6: memref<1x32xf32, #tpu.memory_space<vmem>>, %arg7: memref<1x32xf32, #tpu.memory_space<vmem>>, %arg8: memref<16x32xf32, #tpu.memory_space<vmem>>) attributes {dimension_semantics = [#tpu.dimension_semantics<parallel>], iteration_bounds = array<i64: 1>, scalar_prefetch = 0 : i64, scratch_operands = 0 : i64, tpu.core_type = #tpu.core_type<tc>, window_params = [{transform_indices = @transform_0, window_bounds = array<i64: 16, 32>}, {pipeline_mode = #tpu.pipeline_mode<synchronous>, transform_indices = @transform_1, window_bounds = array<i64: 32, 128>}, {pipeline_mode = #tpu.pipeline_mode<synchronous>, transform_indices = @transform_2, window_bounds = array<i64: 1, 128>}, {pipeline_mode = #tpu.pipeline_mode<synchronous>, transform_indices = @transform_3, window_bounds = array<i64: 128, 32>}, {pipeline_mode = #tpu.pipeline_mode<synchronous>, transform_indices = @transform_4, window_bounds = array<i64: 1, 32>}, {pipeline_mode = #tpu.pipeline_mode<synchronous>, transform_indices = @transform_5, window_bounds = array<i64: 1, 32>}, {pipeline_mode = #tpu.pipeline_mode<synchronous>, transform_indices = @transform_6, window_bounds = array<i64: 1, 32>}, {transform_indices = @transform_7, window_bounds = array<i64: 16, 32>}]} {
    %c0 = arith.constant 0 : index
    %c0_0 = arith.constant 0 : index
    %0 = vector.load %arg1[%c0, %c0_0] : memref<16x32xf32, #tpu.memory_space<vmem>>, vector<16x32xf32>
    %1 = arith.truncf %0 : vector<16x32xf32> to vector<16x32xbf16>
    %cst = arith.constant 0.000000e+00 : f32
    %2 = vector.broadcast %cst : f32 to vector<16x32xf32>
    %c0_1 = arith.constant 0 : index
    %c0_2 = arith.constant 0 : index
    %3 = vector.load %arg2[%c0_1, %c0_2] : memref<32x128xbf16, #tpu.memory_space<vmem>>, vector<32x128xbf16>
    %c0_3 = arith.constant 0 : index
    %c0_4 = arith.constant 0 : index
    %4 = vector.load %arg3[%c0_3, %c0_4] : memref<1x128xf32, #tpu.memory_space<vmem>>, vector<1x128xf32>
    %c0_5 = arith.constant 0 : index
    %c0_6 = arith.constant 0 : index
    %5 = vector.load %arg4[%c0_5, %c0_6] : memref<128x32xbf16, #tpu.memory_space<vmem>>, vector<128x32xbf16>
    %cst_7 = arith.constant dense<0.000000e+00> : vector<16x128xf32>
    %6 = tpu.matmul %1, %3, %cst_7 {dimension_numbers = #tpu.dot_dimension_numbers<[1], [0], [0], [1], [0, 0, 1, 1], [], []>} : vector<16x32xbf16>, vector<32x128xbf16>, vector<16x128xf32> -> vector<16x128xf32>
    %7 = vector.broadcast %4 : vector<1x128xf32> to vector<16x128xf32>
    %8 = arith.addf %6, %7 : vector<16x128xf32>
    %9 = arith.mulf %8, %8 : vector<16x128xf32>
    %10 = arith.mulf %8, %9 : vector<16x128xf32>
    %cst_8 = arith.constant 4.471500e-02 : f32
    %11 = vector.broadcast %cst_8 : f32 to vector<16x128xf32>
    %12 = arith.mulf %11, %10 : vector<16x128xf32>
    %13 = arith.addf %8, %12 : vector<16x128xf32>
    %cst_9 = arith.constant 0.797884583 : f32
    %14 = vector.broadcast %cst_9 : f32 to vector<16x128xf32>
    %15 = arith.mulf %14, %13 : vector<16x128xf32>
    %16 = math.tanh %15 : vector<16x128xf32>
    %cst_10 = arith.constant 1.000000e+00 : f32
    %17 = vector.broadcast %cst_10 : f32 to vector<16x128xf32>
    %18 = arith.addf %17, %16 : vector<16x128xf32>
    %cst_11 = arith.constant 5.000000e-01 : f32
    %19 = vector.broadcast %cst_11 : f32 to vector<16x128xf32>
    %20 = arith.mulf %19, %18 : vector<16x128xf32>
    %21 = arith.mulf %8, %20 : vector<16x128xf32>
    %22 = arith.truncf %21 : vector<16x128xf32> to vector<16x128xbf16>
    %cst_12 = arith.constant dense<0.000000e+00> : vector<16x32xf32>
    %23 = tpu.matmul %22, %5, %cst_12 {dimension_numbers = #tpu.dot_dimension_numbers<[1], [0], [0], [1], [0, 0, 1, 1], [], []>} : vector<16x128xbf16>, vector<128x32xbf16>, vector<16x32xf32> -> vector<16x32xf32>
    %24 = arith.addf %2, %23 : vector<16x32xf32>
    %c0_13 = arith.constant 0 : index
    %c0_14 = arith.constant 0 : index
    %25 = vector.load %arg5[%c0_13, %c0_14] : memref<1x32xf32, #tpu.memory_space<vmem>>, vector<1x32xf32>
    %26 = vector.broadcast %25 : vector<1x32xf32> to vector<16x32xf32>
    %27 = arith.addf %24, %26 : vector<16x32xf32>
    %28 = arith.addf %27, %0 : vector<16x32xf32>
    %cst_15 = arith.constant dense<0.000000e+00> : vector<16xf32>
    %29 = vector.multi_reduction <add>, %28, %cst_15 [1] : vector<16x32xf32> to vector<16xf32>
    %30 = vector.shape_cast %29 : vector<16xf32> to vector<16x1xf32>
    %cst_16 = arith.constant 3.200000e+01 : f32
    %31 = vector.broadcast %cst_16 : f32 to vector<16x1xf32>
    %32 = arith.divf %30, %31 : vector<16x1xf32>
    %33 = vector.broadcast %32 : vector<16x1xf32> to vector<16x32xf32>
    %34 = arith.subf %28, %33 : vector<16x32xf32>
    %35 = arith.mulf %34, %34 : vector<16x32xf32>
    %cst_17 = arith.constant dense<0.000000e+00> : vector<16xf32>
    %36 = vector.multi_reduction <add>, %35, %cst_17 [1] : vector<16x32xf32> to vector<16xf32>
    %37 = vector.shape_cast %36 : vector<16xf32> to vector<16x1xf32>
    %cst_18 = arith.constant 3.200000e+01 : f32
    %38 = vector.broadcast %cst_18 : f32 to vector<16x1xf32>
    %39 = arith.divf %37, %38 : vector<16x1xf32>
    %cst_19 = arith.constant 9.99999996E-13 : f32
    %40 = vector.broadcast %cst_19 : f32 to vector<16x1xf32>
    %41 = arith.addf %39, %40 : vector<16x1xf32>
    %42 = math.rsqrt %41 : vector<16x1xf32>
    %43 = vector.broadcast %42 : vector<16x1xf32> to vector<16x32xf32>
    %44 = arith.mulf %34, %43 : vector<16x32xf32>
    %c0_20 = arith.constant 0 : index
    %c0_21 = arith.constant 0 : index
    %45 = vector.load %arg6[%c0_20, %c0_21] : memref<1x32xf32, #tpu.memory_space<vmem>>, vector<1x32xf32>
    %46 = vector.broadcast %45 : vector<1x32xf32> to vector<16x32xf32>
    %47 = arith.mulf %44, %46 : vector<16x32xf32>
    %c0_22 = arith.constant 0 : index
    %c0_23 = arith.constant 0 : index
    %48 = vector.load %arg7[%c0_22, %c0_23] : memref<1x32xf32, #tpu.memory_space<vmem>>, vector<1x32xf32>
    %49 = vector.broadcast %48 : vector<1x32xf32> to vector<16x32xf32>
    %50 = arith.addf %47, %49 : vector<16x32xf32>
    %c0_24 = arith.constant 0 : index
    %c0_25 = arith.constant 0 : index
    %51 = vector.load %arg8[%c0_24, %c0_25] : memref<16x32xf32, #tpu.memory_space<vmem>>, vector<16x32xf32>
    tpu.vector_store %arg8[%c0_24, %c0_25], %50 {strides = array<i32>} : memref<16x32xf32, #tpu.memory_space<vmem>>, vector<16x32xf32>,
    return
  }
  func.func @transform_0(%arg0: i32) -> (i32, i32) {
    %c0_i32 = arith.constant 0 : i32
    %c0_i32_0 = arith.constant 0 : i32
    return %arg0, %c0_i32 : i32, i32
  }
  func.func @transform_1(%arg0: i32) -> (i32, i32) {
    %c0_i32 = arith.constant 0 : i32
    %c0_i32_0 = arith.constant 0 : i32
    %c0_i32_1 = arith.constant 0 : i32
    return %c0_i32, %c0_i32_0 : i32, i32
  }
  func.func @transform_2(%arg0: i32) -> (i32, i32) {
    %c0_i32 = arith.constant 0 : i32
    %c0_i32_0 = arith.constant 0 : i32
    %c0_i32_1 = arith.constant 0 : i32
    return %c0_i32, %c0_i32_0 : i32, i32
  }
  func.func @transform_3(%arg0: i32) -> (i32, i32) {
    %c0_i32 = arith.constant 0 : i32
    %c0_i32_0 = arith.constant 0 : i32
    %c0_i32_1 = arith.constant 0 : i32
    return %c0_i32, %c0_i32_0 : i32, i32
  }
  func.func @transform_4(%arg0: i32) -> (i32, i32) {
    %c0_i32 = arith.constant 0 : i32
    %c0_i32_0 = arith.constant 0 : i32
    %c0_i32_1 = arith.constant 0 : i32
    return %c0_i32, %c0_i32_0 : i32, i32
  }
  func.func @transform_5(%arg0: i32) -> (i32, i32) {
    %c0_i32 = arith.constant 0 : i32
    %c0_i32_0 = arith.constant 0 : i32
    %c0_i32_1 = arith.constant 0 : i32
    return %c0_i32, %c0_i32_0 : i32, i32
  }
  func.func @transform_6(%arg0: i32) -> (i32, i32) {
    %c0_i32 = arith.constant 0 : i32
    %c0_i32_0 = arith.constant 0 : i32
    %c0_i32_1 = arith.constant 0 : i32
    return %c0_i32, %c0_i32_0 : i32, i32
  }
  func.func @transform_7(%arg0: i32) -> (i32, i32) {
    %c0_i32 = arith.constant 0 : i32
    %c0_i32_0 = arith.constant 0 : i32
    return %arg0, %c0_i32 : i32, i32
  }
}

</mosaic_0001>

<bundles_post_ra>
// kernel: tpu_custom_call.1
= control target key start
LH: loop header
LB: loop body
LE: loop exit
PB: predicated region body
PF: predicated region fallthrough
CT: control target
= control target key end

     0   :  { %s452_s0 = inlined_call_operand.vmem [shape: f32[16,32], index: 0, kind: input, shape index: {}]   ;;  %s453_s1 = inlined_call_operand.vmem [shape: bf16[32,128], index: 1, kind: input, shape index: {}]   ;;  %s454_s2 = inlined_call_operand.vmem [shape: f32[1,128], index: 2, kind: input, shape index: {}]   ;;  %s455_s3 = inlined_call_operand.vmem [shape: bf16[128,32], index: 3, kind: input, shape index: {}]   ;;  %s456_s4 = inlined_call_operand.vmem [shape: f32[1,32], index: 4, kind: input, shape index: {}]   ;;  %s457_s5 = inlined_call_operand.vmem [shape: f32[1,32], index: 5, kind: input, shape index: {}]   ;;  %s458_s6 = inlined_call_operand.vmem [shape: f32[1,32], index: 6, kind: input, shape index: {}]   ;;  %s459_s7 = inlined_call_operand.hbm [shape: f32[16,32], index: 7, kind: output, shape index: {}]  }
   0x1   :  { %v297_v0 = vld [vmem:[%s453_s1 + $0x8] sm:$0xff]  ;;  %v296_v1 = vld [vmem:[%s453_s1] sm:$0xff] }
   0x2   :  { %v28_v2 = vld [vmem:[%s452_s0] sm:$0xff]  ;;  %v29_v3 = vld [vmem:[%s452_s0 + $0x8] sm:$0xff]  ;;  %77 = vmatpush.bf16.msra.mxu0 %v297_v0 }
   0x3   :  { %12 = vsyncpa [#allocation3], 0  ;;  %v30_v4 = vpack.c.bf16 %v29_v3, %v28_v2  ;;  %vm67_vm0 = vcmask 261120   ;;  %v305_v5 = vld [vmem:[%s455_s3 + $0x38] sm:$0xff]  ;;  %v304_v6 = vld [vmem:[%s455_s3 + $0x30] sm:$0xff]  ;;  %v350_v46 = vmov 32.0  }
   0x4   :  { %156 = vmatpush.bf16.msra.mxu1 %v305_v5  ;;  %v303_v7 = vld [vmem:[%s455_s3 + $0x28] sm:$0xff]  ;;  %v302_v8 = vld [vmem:[%s455_s3 + $0x20] sm:$0xff]  ;;  %v301_v9 = vld [vmem:[%s455_s3 + $0x18] sm:$0xff]  ;;  %s243_s8 = sshll.u32 %s459_s7, 4  ;;  %s353_s9 = smov 8   ;;  %s244_s8 = int_to_ptr.hbm [resolvable:$true] %s243_s8 }
   0x5   :  { %v300_v10 = vld [vmem:[%s455_s3 + $0x10] sm:$0xff]  ;;  %v299_v11 = vld [vmem:[%s455_s3 + $0x8] sm:$0xff]  ;;  %v310_v12 = vld [vmem:[%s454_s2] ss:$0 sm:$0xff] }
   0x6   :  { %78 = vmatpush.bf16.msra.mxu0 %v296_v1  ;;  %v298_v13 = vld [vmem:[%s455_s3] sm:$0xff] }
   0x7   :  { %v311_v37 = vld [vmem:[%s456_s4] ss:$0 sm:$0xff] }
   0x8   :  { %157 = vmatpush.bf16.msra.mxu1 %v304_v6 }
   0x9   :  { %263 = vmatmul.msk.bf16.vlgmr.msra.gmra.mxu0 %vm67_vm0, %v30_v4 }
   0xc   :  { %158 = vmatpush.bf16.msra.mxu1 %v303_v7 }
  0x10   :  { %159 = vmatpush.bf16.msra.mxu1 %v302_v8 }
  0x14   :  { %160 = vmatpush.bf16.msra.mxu1 %v301_v9 }
  0x18   :  { %161 = vmatpush.bf16.msra.mxu1 %v300_v10 }
  0x1c   :  { %162 = vmatpush.bf16.msra.mxu1 %v299_v11 }
  0x20   :  { %163 = vmatpush.bf16.msra.mxu1 %v298_v13  ;;  %v312_v13 = vld [vmem:[%s457_s5] ss:$0 sm:$0xff]  ;;  %s351_s5 = smov [#allocation2]  }
  0x21   :  { %s241_s28 = sshll.u32 %s351_s5, 4  ;;  %s242_s28 = int_to_ptr.vmem [resolvable:$true] %s241_s28 }
  0x86   :  { %v80_v14 = vpop.f32.mrf.mxu0 }
  0x87   :  { %v81_v15 = vadd.f32 %v310_v12, %v80_v14 }
  0x89   :  { %v85_v16 = vmul.f32 %v81_v15, %v81_v15 }
  0x8b   :  { %v87_v17 = vmul.f32 %v85_v16, %v81_v15 }
  0x8d   :  { %v89_v18 = vmul.f32 0.044715, %v87_v17  ;;  %v313_v17 = vld [vmem:[%s458_s6] ss:$0 sm:$0xff]  ;;  %s352_s6 = smov 128  }
  0x8e   :  { %v82_v19 = vpop.f32.mrf.mxu0 }
  0x8f   :  { %v91_v20 = vadd.f32 %v89_v18, %v81_v15  ;;  %v83_v21 = vadd.f32 %v310_v12, %v82_v19 }
  0x91   :  { %v86_v22 = vmul.f32 %v83_v21, %v83_v21  ;;  %v93_v23 = vmul.f32 0.7978846, %v91_v20 }
  0x93   :  { %v88_v24 = vmul.f32 %v86_v22, %v83_v21  ;;  %314 = vtanh.f32 %v93_v23 }
  0x95   :  { %v90_v25 = vmul.f32 0.044715, %v88_v24 }
  0x97   :  { %v92_v26 = vadd.f32 %v90_v25, %v83_v21 }
  0x99   :  { %v94_v27 = vmul.f32 0.7978846, %v92_v26  ;;  %v315_v28 = vpop.eup %314 }
  0x9a   :  { %v97_v29 = vadd.f32 1.0, %v315_v28 }
  0x9b   :  { %316 = vtanh.f32 %v94_v27 }
  0x9c   :  { %v99_v32 = vmul.f32 0.5, %v97_v29  ;;  %318 = vrcp.f32 %v350_v46 }
  0x9e   :  { %v101_v34 = vmul.f32 %v99_v32, %v81_v15 }
  0xa1   :  { %v317_v30 = vpop.eup %316 }
  0xa2   :  { %v98_v31 = vadd.f32 1.0, %v317_v30  ;;  %v319_v47 = vpop.eup %318 }
  0xa3   :  { %v179_v48 = vmul.f32 32.0, %v319_v47  ;;  %vm183_vm1 = vweird.f32 %v319_v47 }
  0xa4   :  { %v100_v33 = vmul.f32 0.5, %v98_v31 }
  0xa5   :  { %v180_v49 = vsub.f32 1.0, %v179_v48 }
  0xa6   :  { %v102_v35 = vmul.f32 %v100_v33, %v83_v21 }
  0xa7   :  { %v181_v50 = vmul.f32 %v319_v47, %v180_v49 }
  0xa8   :  { %v103_v36 = vpack.c.bf16 %v102_v35, %v101_v34 }
  0xa9   :  { %v182_v51 = vadd.f32 %v319_v47, %v181_v50 }
  0xaa   :  { %164 = vmatmul.bf16.vlgmr.msra.gmra.mxu1 %v103_v36 }
  0xab   :  { %v184_v52 = vsel %vm183_vm1, %v319_v47, %v182_v51 }
 0x127   :  { %v165_v38 = vpop.f32.mrf.mxu1 }
 0x128   :  { %v166_v39 = vadd.f32 %v311_v37, %v165_v38 }
 0x12a   :  { %v170_v40 = vadd.f32 %v166_v39, %v28_v2 }
 0x12c   :  { %v172_v41 = vsel %vm67_vm0, %v170_v40, 0.0 }
 0x12d   :  { %173 = vadd.xlane.f32.xlu0 %v172_v41 }
 0x12f   :  { %v167_v42 = vpop.f32.mrf.mxu1 }
 0x130   :  { %v168_v43 = vadd.f32 %v311_v37, %v167_v42 }
 0x132   :  { %v171_v44 = vadd.f32 %v168_v43, %v29_v3 }
 0x134   :  { %v175_v45 = vsel %vm67_vm0, %v171_v44, 0.0 }
 0x135   :  { %176 = vadd.xlane.f32.xlu0 %v175_v45 }
 0x1a0   :  { %v174_v53 = vpop.xlane.xlu0 %173 }
 0x1a1   :  { %v185_v54 = vmul.f32 %v184_v52, %v174_v53 }
 0x1a3   :  { %v187_v55 = vsub.f32 %v170_v40, %v185_v54 }
 0x1a5   :  { %v189_v56 = vmul.f32 %v187_v55, %v187_v55 }
 0x1a7   :  { %v191_v57 = vsel %vm67_vm0, %v189_v56, 0.0 }
 0x1a8   :  { %192 = vadd.xlane.f32.xlu1 %v191_v57  ;;  %v177_v58 = vpop.xlane.xlu0 %176 }
 0x1a9   :  { %v186_v59 = vmul.f32 %v184_v52, %v177_v58 }
 0x1ab   :  { %v188_v60 = vsub.f32 %v171_v44, %v186_v59 }
 0x1ad   :  { %v190_v61 = vmul.f32 %v188_v60, %v188_v60 }
 0x1af   :  { %v194_v62 = vsel %vm67_vm0, %v190_v61, 0.0 }
 0x1b0   :  { %195 = vadd.xlane.f32.xlu1 %v194_v62 }
 0x21b   :  { %v193_v63 = vpop.xlane.xlu1 %192 }
 0x21c   :  { %v197_v0 = vmul.f32 %v193_v63, %v184_v52 }
 0x21e   :  { %v199_v1 = vadd.f32 1e-12, %v197_v0 }
 0x220   :  { %320 = vrsqrt.f32 %v199_v1  ;;  %vm207_vm3 = vweird.f32 %v199_v1 }
 0x223   :  { %v196_v2 = vpop.xlane.xlu1 %195 }
 0x224   :  { %v198_v3 = vmul.f32 %v196_v2, %v184_v52 }
 0x226   :  { %v321_v4 = vpop.eup %320  ;;  %v200_v5 = vadd.f32 1e-12, %v198_v3 }
 0x227   :  { %v202_v6 = vmul.f32 %v321_v4, %v199_v1  ;;  %vm208_vm2 = vweird.f32 %v321_v4 }
 0x228   :  { %322 = vrsqrt.f32 %v200_v5  ;;  %vm209_vm4 = vmor %vm207_vm3, %vm208_vm2  ;;  %vm217_vm6 = vweird.f32 %v200_v5 }
 0x229   :  { %v203_v7 = vmul.f32 %v321_v4, %v202_v6 }
 0x22b   :  { %v204_v8 = vmul.f32 0.5, %v203_v7 }
 0x22d   :  { %v205_v9 = vsub.f32 1.5, %v204_v8 }
 0x22e   :  { %v323_v10 = vpop.eup %322 }
 0x22f   :  { %v206_v11 = vmul.f32 %v321_v4, %v205_v9  ;;  %v212_v12 = vmul.f32 %v323_v10, %v200_v5  ;;  %vm218_vm5 = vweird.f32 %v323_v10 }
 0x230   :  { %vm219_vm7 = vmor %vm217_vm6, %vm218_vm5 }
 0x231   :  { %v210_v14 = vsel %vm209_vm4, %v321_v4, %v206_v11  ;;  %v213_v15 = vmul.f32 %v323_v10, %v212_v12 }
 0x232   :  { %v221_v16 = vmul.f32 %v210_v14, %v187_v55 }
 0x233   :  { %v214_v18 = vmul.f32 0.5, %v213_v15 }
 0x234   :  { %v227_v19 = vmul.f32 %v312_v13, %v221_v16 }
 0x235   :  { %v215_v20 = vsub.f32 1.5, %v214_v18 }
 0x236   :  { %v233_v21 = vadd.f32 %v313_v17, %v227_v19 }
 0x237   :  { %v216_v22 = vmul.f32 %v323_v10, %v215_v20 }
 0x238   :  { %235 = vst.msk [vmem:[#allocation2] sm:$0xff] %vm67_vm0, %v233_v21 }
 0x239   :  { %v220_v23 = vsel %vm219_vm7, %v323_v10, %v216_v22 }
 0x23a   :  { %v222_v24 = vmul.f32 %v220_v23, %v188_v60 }
 0x23c   :  { %v228_v25 = vmul.f32 %v312_v13, %v222_v24 }
 0x23e   :  { %v234_v26 = vadd.f32 %v313_v17, %v228_v25 }
 0x240   :  { %236 = vst.msk [vmem:[#allocation2 + $0x8] sm:$0xff] %vm67_vm0, %v234_v26 }
 0x241   :  { %249 = dma.vmem_to_hbm [thread:$0]  %s242_s28, 256, %s244_s8, [#allocation3], %s352_s6, %s352_s6, %s353_s9  }
 0x242   :  { %348 = dma.done.wait [#allocation3], 256  }
 0x243   :  { %349 = vsyncadd [#allocation3], 4294967040 }
 0x244   :  { %254 = vsyncpa [#allocation3], 1 }

// kernel: tpu_custom_call.1
= control target key start
LH: loop header
LB: loop body
LE: loop exit
PB: predicated region body
PF: predicated region fallthrough
CT: control target
= control target key end

     0   :  { %s452_s0 = inlined_call_operand.vmem [shape: f32[16,32], index: 0, kind: input, shape index: {}]   ;;  %s453_s1 = inlined_call_operand.vmem [shape: bf16[32,128], index: 1, kind: input, shape index: {}]   ;;  %s454_s2 = inlined_call_operand.vmem [shape: f32[1,128], index: 2, kind: input, shape index: {}]   ;;  %s455_s3 = inlined_call_operand.vmem [shape: bf16[128,32], index: 3, kind: input, shape index: {}]   ;;  %s456_s4 = inlined_call_operand.vmem [shape: f32[1,32], index: 4, kind: input, shape index: {}]   ;;  %s457_s5 = inlined_call_operand.vmem [shape: f32[1,32], index: 5, kind: input, shape index: {}]   ;;  %s458_s6 = inlined_call_operand.vmem [shape: f32[1,32], index: 6, kind: input, shape index: {}]   ;;  %s459_s7 = inlined_call_operand.hbm [shape: f32[16,32], index: 7, kind: output, shape index: {}]  }
   0x1   :  { %v297_v0 = vld [vmem:[%s453_s1 + $0x8] sm:$0xff]  ;;  %v296_v1 = vld [vmem:[%s453_s1] sm:$0xff] }
   0x2   :  { %v28_v2 = vld [vmem:[%s452_s0] sm:$0xff]  ;;  %v29_v3 = vld [vmem:[%s452_s0 + $0x8] sm:$0xff]  ;;  %77 = vmatpush.bf16.msra.mxu0 %v297_v0 }
   0x3   :  { %12 = vsyncpa [#allocation3], 0  ;;  %v30_v4 = vpack.c.bf16 %v29_v3, %v28_v2  ;;  %vm67_vm0 = vcmask 261120   ;;  %v305_v5 = vld [vmem:[%s455_s3 + $0x38] sm:$0xff]  ;;  %v304_v6 = vld [vmem:[%s455_s3 + $0x30] sm:$0xff]  ;;  %v350_v46 = vmov 32.0  }
   0x4   :  { %156 = vmatpush.bf16.msra.mxu1 %v305_v5  ;;  %v303_v7 = vld [vmem:[%s455_s3 + $0x28] sm:$0xff]  ;;  %v302_v8 = vld [vmem:[%s455_s3 + $0x20] sm:$0xff]  ;;  %v301_v9 = vld [vmem:[%s455_s3 + $0x18] sm:$0xff]  ;;  %s243_s8 = sshll.u32 %s459_s7, 4  ;;  %s353_s9 = smov 8   ;;  %s244_s8 = int_to_ptr.hbm [resolvable:$true] %s243_s8 }
   0x5   :  { %v300_v10 = vld [vmem:[%s455_s3 + $0x10] sm:$0xff]  ;;  %v299_v11 = vld [vmem:[%s455_s3 + $0x8] sm:$0xff]  ;;  %v310_v12 = vld [vmem:[%s454_s2] ss:$0 sm:$0xff] }
   0x6   :  { %78 = vmatpush.bf16.msra.mxu0 %v296_v1  ;;  %v298_v13 = vld [vmem:[%s455_s3] sm:$0xff] }
   0x7   :  { %v311_v37 = vld [vmem:[%s456_s4] ss:$0 sm:$0xff] }
   0x8   :  { %157 = vmatpush.bf16.msra.mxu1 %v304_v6 }
   0x9   :  { %263 = vmatmul.msk.bf16.vlgmr.msra.gmra.mxu0 %vm67_vm0, %v30_v4 }
   0xc   :  { %158 = vmatpush.bf16.msra.mxu1 %v303_v7 }
  0x10   :  { %159 = vmatpush.bf16.msra.mxu1 %v302_v8 }
  0x14   :  { %160 = vmatpush.bf16.msra.mxu1 %v301_v9 }
  0x18   :  { %161 = vmatpush.bf16.msra.mxu1 %v300_v10 }
  0x1c   :  { %162 = vmatpush.bf16.msra.mxu1 %v299_v11 }
  0x20   :  { %163 = vmatpush.bf16.msra.mxu1 %v298_v13  ;;  %v312_v13 = vld [vmem:[%s457_s5] ss:$0 sm:$0xff]  ;;  %s351_s5 = smov [#allocation2]  }
  0x21   :  { %s241_s28 = sshll.u32 %s351_s5, 4  ;;  %s242_s28 = int_to_ptr.vmem [resolvable:$true] %s241_s28 }
  0x86   :  { %v80_v14 = vpop.f32.mrf.mxu0 }
  0x87   :  { %v81_v15 = vadd.f32 %v310_v12, %v80_v14 }
  0x89   :  { %v85_v16 = vmul.f32 %v81_v15, %v81_v15 }
  0x8b   :  { %v87_v17 = vmul.f32 %v85_v16, %v81_v15 }
  0x8d   :  { %v89_v18 = vmul.f32 0.044715, %v87_v17  ;;  %v313_v17 = vld [vmem:[%s458_s6] ss:$0 sm:$0xff]  ;;  %s352_s6 = smov 128  }
  0x8e   :  { %v82_v19 = vpop.f32.mrf.mxu0 }
  0x8f   :  { %v91_v20 = vadd.f32 %v89_v18, %v81_v15  ;;  %v83_v21 = vadd.f32 %v310_v12, %v82_v19 }
  0x91   :  { %v86_v22 = vmul.f32 %v83_v21, %v83_v21  ;;  %v93_v23 = vmul.f32 0.7978846, %v91_v20 }
  0x93   :  { %v88_v24 = vmul.f32 %v86_v22, %v83_v21  ;;  %314 = vtanh.f32 %v93_v23 }
  0x95   :  { %v90_v25 = vmul.f32 0.044715, %v88_v24 }
  0x97   :  { %v92_v26 = vadd.f32 %v90_v25, %v83_v21 }
  0x99   :  { %v94_v27 = vmul.f32 0.7978846, %v92_v26  ;;  %v315_v28 = vpop.eup %314 }
  0x9a   :  { %v97_v29 = vadd.f32 1.0, %v315_v28 }
  0x9b   :  { %316 = vtanh.f32 %v94_v27 }
  0x9c   :  { %v99_v32 = vmul.f32 0.5, %v97_v29  ;;  %318 = vrcp.f32 %v350_v46 }
  0x9e   :  { %v101_v34 = vmul.f32 %v99_v32, %v81_v15 }
  0xa1   :  { %v317_v30 = vpop.eup %316 }
  0xa2   :  { %v98_v31 = vadd.f32 1.0, %v317_v30  ;;  %v319_v47 = vpop.eup %318 }
  0xa3   :  { %v179_v48 = vmul.f32 32.0, %v319_v47  ;;  %vm183_vm1 = vweird.f32 %v319_v47 }
  0xa4   :  { %v100_v33 = vmul.f32 0.5, %v98_v31 }
  0xa5   :  { %v180_v49 = vsub.f32 1.0, %v179_v48 }
  0xa6   :  { %v102_v35 = vmul.f32 %v100_v33, %v83_v21 }
  0xa7   :  { %v181_v50 = vmul.f32 %v319_v47, %v180_v49 }
  0xa8   :  { %v103_v36 = vpack.c.bf16 %v102_v35, %v101_v34 }
  0xa9   :  { %v182_v51 = vadd.f32 %v319_v47, %v181_v50 }
  0xaa   :  { %164 = vmatmul.bf16.vlgmr.msra.gmra.mxu1 %v103_v36 }
  0xab   :  { %v184_v52 = vsel %vm183_vm1, %v319_v47, %v182_v51 }
 0x127   :  { %v165_v38 = vpop.f32.mrf.mxu1 }
 0x128   :  { %v166_v39 = vadd.f32 %v311_v37, %v165_v38 }
 0x12a   :  { %v170_v40 = vadd.f32 %v166_v39, %v28_v2 }
 0x12c   :  { %v172_v41 = vsel %vm67_vm0, %v170_v40, 0.0 }
 0x12d   :  { %173 = vadd.xlane.f32.xlu0 %v172_v41 }
 0x12f   :  { %v167_v42 = vpop.f32.mrf.mxu1 }
 0x130   :  { %v168_v43 = vadd.f32 %v311_v37, %v167_v42 }
 0x132   :  { %v171_v44 = vadd.f32 %v168_v43, %v29_v3 }
 0x134   :  { %v175_v45 = vsel %vm67_vm0, %v171_v44, 0.0 }
 0x135   :  { %176 = vadd.xlane.f32.xlu0 %v175_v45 }
 0x1a0   :  { %v174_v53 = vpop.xlane.xlu0 %173 }
 0x1a1   :  { %v185_v54 = vmul.f32 %v184_v52, %v174_v53 }
 0x1a3   :  { %v187_v55 = vsub.f32 %v170_v40, %v185_v54 }
 0x1a5   :  { %v189_v56 = vmul.f32 %v187_v55, %v187_v55 }
 0x1a7   :  { %v191_v57 = vsel %vm67_vm0, %v189_v56, 0.0 }
 0x1a8   :  { %192 = vadd.xlane.f32.xlu1 %v191_v57  ;;  %v177_v58 = vpop.xlane.xlu0 %176 }
 0x1a9   :  { %v186_v59 = vmul.f32 %v184_v52, %v177_v58 }
 0x1ab   :  { %v188_v60 = vsub.f32 %v171_v44, %v186_v59 }
 0x1ad   :  { %v190_v61 = vmul.f32 %v188_v60, %v188_v60 }
 0x1af   :  { %v194_v62 = vsel %vm67_vm0, %v190_v61, 0.0 }
 0x1b0   :  { %195 = vadd.xlane.f32.xlu1 %v194_v62 }
 0x21b   :  { %v193_v63 = vpop.xlane.xlu1 %192 }
 0x21c   :  { %v197_v0 = vmul.f32 %v193_v63, %v184_v52 }
 0x21e   :  { %v199_v1 = vadd.f32 1e-12, %v197_v0 }
 0x220   :  { %320 = vrsqrt.f32 %v199_v1  ;;  %vm207_vm3 = vweird.f32 %v199_v1 }
 0x223   :  { %v196_v2 = vpop.xlane.xlu1 %195 }
 0x224   :  { %v198_v3 = vmul.f32 %v196_v2, %v184_v52 }
 0x226   :  { %v321_v4 = vpop.eup %320  ;;  %v200_v5 = vadd.f32 1e-12, %v198_v3 }
 0x227   :  { %v202_v6 = vmul.f32 %v321_v4, %v199_v1  ;;  %vm208_vm2 = vweird.f32 %v321_v4 }
 0x228   :  { %322 = vrsqrt.f32 %v200_v5  ;;  %vm209_vm4 = vmor %vm207_vm3, %vm208_vm2  ;;  %vm217_vm6 = vweird.f32 %v200_v5 }
 0x229   :  { %v203_v7 = vmul.f32 %v321_v4, %v202_v6 }
 0x22b   :  { %v204_v8 = vmul.f32 0.5, %v203_v7 }
 0x22d   :  { %v205_v9 = vsub.f32 1.5, %v204_v8 }
 0x22e   :  { %v323_v10 = vpop.eup %322 }
 0x22f   :  { %v206_v11 = vmul.f32 %v321_v4, %v205_v9  ;;  %v212_v12 = vmul.f32 %v323_v10, %v200_v5  ;;  %vm218_vm5 = vweird.f32 %v323_v10 }
 0x230   :  { %vm219_vm7 = vmor %vm217_vm6, %vm218_vm5 }
 0x231   :  { %v210_v14 = vsel %vm209_vm4, %v321_v4, %v206_v11  ;;  %v213_v15 = vmul.f32 %v323_v10, %v212_v12 }
 0x232   :  { %v221_v16 = vmul.f32 %v210_v14, %v187_v55 }
 0x233   :  { %v214_v18 = vmul.f32 0.5, %v213_v15 }
 0x234   :  { %v227_v19 = vmul.f32 %v312_v13, %v221_v16 }
 0x235   :  { %v215_v20 = vsub.f32 1.5, %v214_v18 }
 0x236   :  { %v233_v21 = vadd.f32 %v313_v17, %v227_v19 }
 0x237   :  { %v216_v22 = vmul.f32 %v323_v10, %v215_v20 }
 0x238   :  { %235 = vst.msk [vmem:[#allocation2] sm:$0xff] %vm67_vm0, %v233_v21 }
 0x239   :  { %v220_v23 = vsel %vm219_vm7, %v323_v10, %v216_v22 }
 0x23a   :  { %v222_v24 = vmul.f32 %v220_v23, %v188_v60 }
 0x23c   :  { %v228_v25 = vmul.f32 %v312_v13, %v222_v24 }
 0x23e   :  { %v234_v26 = vadd.f32 %v313_v17, %v228_v25 }
 0x240   :  { %236 = vst.msk [vmem:[#allocation2 + $0x8] sm:$0xff] %vm67_vm0, %v234_v26 }
 0x241   :  { %249 = dma.vmem_to_hbm [thread:$0]  %s242_s28, 256, %s244_s8, [#allocation3], %s352_s6, %s352_s6, %s353_s9  }
 0x242   :  { %348 = dma.done.wait [#allocation3], 256  }
 0x243   :  { %349 = vsyncadd [#allocation3], 4294967040 }
 0x244   :  { %254 = vsyncpa [#allocation3], 1 }

</bundles_post_ra>
